<compile_context>
chip_gen: v6e
topology: v6e:2x2x1
jax: 0.10.0
libtpu: 0.0.40
codegen_flags: <defaults>
</compile_context>

<pallas_src>
import functools

import jax
import jax.numpy as jnp
from jax.experimental import pallas as pl
from jax.experimental.pallas import tpu as pltpu

SUB = 8      # sublanes per f32 vreg
LANE = 128   # lanes per vreg


def _masked_bce_kernel(x_ref, t_ref, sum_ref, cnt_ref, *,
                       ignore_value, rows_valid, tile_rows):
    i = pl.program_id(0)

    x = x_ref[...].astype(jnp.float32)
    t = t_ref[...].astype(jnp.float32)

    mask = t != jnp.float32(ignore_value)
    # Guard the (possibly) partial last block: rows past `rows_valid` hold
    # undefined data.  Statically elided when tile_rows divides rows_valid.
    if rows_valid % tile_rows != 0:
        row_ids = jax.lax.broadcasted_iota(jnp.int32, (tile_rows, LANE), 0)
        mask = mask & ((row_ids + i * tile_rows) < rows_valid)

    # nn.BCELoss: -(t*log(x) + (1-t)*log(1-x)) with logs clamped at -100
    # (matches PyTorch's internal clamp).  Exactly 2 EUP logs per element.
    log_p = jnp.maximum(jnp.log(x), jnp.float32(-100.0))
    log_1mp = jnp.maximum(jnp.log(1.0 - x), jnp.float32(-100.0))
    loss = -(t * log_p + (1.0 - t) * log_1mp)
    loss = jnp.where(mask, loss, jnp.float32(0.0))
    msk = mask.astype(jnp.float32)

    # VPU-only reduction of the (tile_rows, 128) tile to one (8, 128) partial
    # block per grid step; cross-lane reduction is deferred to the JAX glue.
    sum_ref[...] = loss.reshape(tile_rows // SUB, SUB, LANE).sum(axis=0)
    cnt_ref[...] = msk.reshape(tile_rows // SUB, SUB, LANE).sum(axis=0)


def masked_loss(inp, tgt, ignore_value=-1.0, tile_rows=1024):
    """Pallas equivalent of MaskedLoss.forward(input, target)."""
    n = inp.size
    flat_x = inp.reshape(-1)
    flat_t = tgt.reshape(-1)

    chunk = SUB * LANE
    n_pad = pl.cdiv(n, chunk) * chunk
    if n_pad != n:
        # Only when n is not already a multiple of 8*128: small pad so the
        # flat arrays reshape to whole (8, 128) tiles.  Padded input = 0.5
        # (log-safe), padded target = ignore_value (masked out).
        pad = n_pad - n
        flat_x = jnp.pad(flat_x, (0, pad),
                         constant_values=jnp.asarray(0.5, flat_x.dtype))
        flat_t = jnp.pad(flat_t, (0, pad),
                         constant_values=jnp.asarray(ignore_value, flat_t.dtype))

    rows = n_pad // LANE                    # multiple of 8
    tile_rows = min(int(tile_rows), rows)   # both multiples of 8
    nblocks = pl.cdiv(rows, tile_rows)

    x2 = flat_x.reshape(rows, LANE)
    t2 = flat_t.reshape(rows, LANE)

    kernel = functools.partial(
        _masked_bce_kernel,
        ignore_value=float(ignore_value),
        rows_valid=rows,
        tile_rows=tile_rows,
    )

    sum_p, cnt_p = pl.pallas_call(
        kernel,
        out_shape=(
            jax.ShapeDtypeStruct((nblocks * SUB, LANE), jnp.float32),
            jax.ShapeDtypeStruct((nblocks * SUB, LANE), jnp.float32),
        ),
        grid=(nblocks,),
        in_specs=[
            pl.BlockSpec((tile_rows, LANE), lambda i: (i, 0)),
            pl.BlockSpec((tile_rows, LANE), lambda i: (i, 0)),
        ],
        out_specs=(
            pl.BlockSpec((SUB, LANE), lambda i: (i, 0)),
            pl.BlockSpec((SUB, LANE), lambda i: (i, 0)),
        ),
        compiler_params=pltpu.CompilerParams(
            dimension_semantics=("parallel",),
        ),
    )(x2, t2)

    total = jnp.sum(sum_p)
    count = jnp.sum(cnt_p)
    # loss.mean() if any valid element, else 0.0 (PyTorch fallback).
    return jnp.where(count > 0, total / jnp.maximum(count, 1.0),
                     jnp.float32(0.0))


def _reference_masked_loss(inp, tgt, ignore_value=-1.0):
    """Pure-JAX reference mirroring the PyTorch forward semantics."""
    x = inp.reshape(-1).astype(jnp.float32)
    t = tgt.reshape(-1).astype(jnp.float32)
    mask = t != ignore_value
    log_p = jnp.maximum(jnp.log(x), -100.0)
    log_1mp = jnp.maximum(jnp.log(1.0 - x), -100.0)
    loss = -(t * log_p + (1.0 - t) * log_1mp)
    loss = jnp.where(mask, loss, 0.0)
    cnt = jnp.sum(mask.astype(jnp.float32))
    return jnp.where(cnt > 0, jnp.sum(loss) / jnp.maximum(cnt, 1.0), 0.0)


if __name__ == "__main__":
    key = jax.random.PRNGKey(0)
    k_in, k_tgt, k_ign = jax.random.split(key, 3)

    # MaskedLoss has no learnable parameters; ignore_value = -1.0.
    B, C, H, W = 2, 4, 16, 16  # NCHW-shaped predictions/targets

    # input: probabilities in (0, 1) (as produced by a sigmoid head)
    inp = jax.random.uniform(k_in, (B, C, H, W), jnp.float32,
                             minval=1e-3, maxval=1.0 - 1e-3)
    # target: binary labels, with ~25% entries marked as ignore (-1.0)
    tgt = jax.random.bernoulli(k_tgt, 0.5, (B, C, H, W)).astype(jnp.float32)
    ignore_mask = jax.random.bernoulli(k_ign, 0.25, (B, C, H, W))
    tgt = jnp.where(ignore_mask, jnp.float32(-1.0), tgt)

    out = masked_loss(inp, tgt, ignore_value=-1.0)
    out = jax.block_until_ready(out)

    ref = _reference_masked_loss(inp, tgt, ignore_value=-1.0)
    assert jnp.allclose(out, ref, rtol=1e-5, atol=1e-6), (out, ref)

    print("KERNEL_OK")
</pallas_src>

<mosaic_0001>
module attributes {stable_mosaic.version = 11 : i64} {
  func.func @_masked_bce_kernel(%arg0: i32, %arg1: memref<16x128xf32, #tpu.memory_space<vmem>>, %arg2: memref<16x128xf32, #tpu.memory_space<vmem>>, %arg3: memref<8x128xf32, #tpu.memory_space<vmem>>, %arg4: memref<8x128xf32, #tpu.memory_space<vmem>>) attributes {dimension_semantics = [#tpu.dimension_semantics<parallel>], iteration_bounds = array<i64: 1>, scalar_prefetch = 0 : i64, scratch_operands = 0 : i64, tpu.core_type = #tpu.core_type<tc>, window_params = [{transform_indices = @transform_0, window_bounds = array<i64: 16, 128>}, {transform_indices = @transform_1, window_bounds = array<i64: 16, 128>}, {transform_indices = @transform_2, window_bounds = array<i64: 8, 128>}, {transform_indices = @transform_3, window_bounds = array<i64: 8, 128>}]} {
    %c0 = arith.constant 0 : index
    %c0_0 = arith.constant 0 : index
    %0 = vector.load %arg1[%c0, %c0_0] : memref<16x128xf32, #tpu.memory_space<vmem>>, vector<16x128xf32>
    %c0_1 = arith.constant 0 : index
    %c0_2 = arith.constant 0 : index
    %1 = vector.load %arg2[%c0_1, %c0_2] : memref<16x128xf32, #tpu.memory_space<vmem>>, vector<16x128xf32>
    %cst = arith.constant -1.000000e+00 : f32
    %2 = vector.broadcast %cst : f32 to vector<16x128xf32>
    %3 = arith.cmpf one, %1, %2 : vector<16x128xf32>
    %4 = math.log %0 : vector<16x128xf32>
    %cst_3 = arith.constant -1.000000e+02 : f32
    %5 = vector.broadcast %cst_3 : f32 to vector<16x128xf32>
    %6 = arith.maximumf %4, %5 : vector<16x128xf32>
    %cst_4 = arith.constant 1.000000e+00 : f32
    %7 = vector.broadcast %cst_4 : f32 to vector<16x128xf32>
    %8 = arith.subf %7, %0 : vector<16x128xf32>
    %9 = math.log %8 : vector<16x128xf32>
    %cst_5 = arith.constant -1.000000e+02 : f32
    %10 = vector.broadcast %cst_5 : f32 to vector<16x128xf32>
    %11 = arith.maximumf %9, %10 : vector<16x128xf32>
    %12 = arith.mulf %1, %6 : vector<16x128xf32>
    %cst_6 = arith.constant 1.000000e+00 : f32
    %13 = vector.broadcast %cst_6 : f32 to vector<16x128xf32>
    %14 = arith.subf %13, %1 : vector<16x128xf32>
    %15 = arith.mulf %14, %11 : vector<16x128xf32>
    %16 = arith.addf %12, %15 : vector<16x128xf32>
    %cst_7 = arith.constant 0.000000e+00 : f32
    %17 = vector.broadcast %cst_7 : f32 to vector<16x128xf32>
    %18 = arith.subf %17, %16 : vector<16x128xf32>
    %cst_8 = arith.constant 0.000000e+00 : f32
    %19 = vector.broadcast %cst_8 : f32 to vector<16x128xf32>
    %20 = arith.select %3, %18, %19 : vector<16x128xi1>, vector<16x128xf32>
    %21 = arith.extui %3 : vector<16x128xi1> to vector<16x128xi32>
    %22 = arith.sitofp %21 : vector<16x128xi32> to vector<16x128xf32>
    %23 = vector.shape_cast %20 : vector<16x128xf32> to vector<2x8x128xf32>
    %cst_9 = arith.constant dense<0.000000e+00> : vector<8x128xf32>
    %24 = vector.multi_reduction <add>, %23, %cst_9 [0] : vector<2x8x128xf32> to vector<8x128xf32>
    %c0_10 = arith.constant 0 : index
    %c0_11 = arith.constant 0 : index
    %25 = vector.load %arg3[%c0_10, %c0_11] : memref<8x128xf32, #tpu.memory_space<vmem>>, vector<8x128xf32>
    tpu.vector_store %arg3[%c0_10, %c0_11], %24 {strides = array<i32>} : memref<8x128xf32, #tpu.memory_space<vmem>>, vector<8x128xf32>,
    %26 = vector.shape_cast %22 : vector<16x128xf32> to vector<2x8x128xf32>
    %cst_12 = arith.constant dense<0.000000e+00> : vector<8x128xf32>
    %27 = vector.multi_reduction <add>, %26, %cst_12 [0] : vector<2x8x128xf32> to vector<8x128xf32>
    %c0_13 = arith.constant 0 : index
    %c0_14 = arith.constant 0 : index
    %28 = vector.load %arg4[%c0_13, %c0_14] : memref<8x128xf32, #tpu.memory_space<vmem>>, vector<8x128xf32>
    tpu.vector_store %arg4[%c0_13, %c0_14], %27 {strides = array<i32>} : memref<8x128xf32, #tpu.memory_space<vmem>>, vector<8x128xf32>,
    return
  }
  func.func @transform_0(%arg0: i32) -> (i32, i32) {
    %c0_i32 = arith.constant 0 : i32
    %c0_i32_0 = arith.constant 0 : i32
    return %arg0, %c0_i32 : i32, i32
  }
  func.func @transform_1(%arg0: i32) -> (i32, i32) {
    %c0_i32 = arith.constant 0 : i32
    %c0_i32_0 = arith.constant 0 : i32
    return %arg0, %c0_i32 : i32, i32
  }
  func.func @transform_2(%arg0: i32) -> (i32, i32) {
    %c0_i32 = arith.constant 0 : i32
    %c0_i32_0 = arith.constant 0 : i32
    return %arg0, %c0_i32 : i32, i32
  }
  func.func @transform_3(%arg0: i32) -> (i32, i32) {
    %c0_i32 = arith.constant 0 : i32
    %c0_i32_0 = arith.constant 0 : i32
    return %arg0, %c0_i32 : i32, i32
  }
}

</mosaic_0001>

<bundles_post_ra>
// kernel: tpu_custom_call.1
= control target key start
LH: loop header
LB: loop body
LE: loop exit
PB: predicated region body
PF: predicated region fallthrough
CT: control target
= control target key end

     0   :  { %9 = vsyncpa [#allocation3], 0  ;;  %s261_s0 = inlined_call_operand.hbm [shape: f32[16,128], index: 0, kind: input, shape index: {}]   ;;  %s262_s1 = inlined_call_operand.hbm [shape: f32[16,128], index: 1, kind: input, shape index: {}]   ;;  %s263_s2 = inlined_call_operand.hbm [shape: f32[8,128], index: 2, kind: output, shape index: {0}]   ;;  %s264_s3 = inlined_call_operand.hbm [shape: f32[8,128], index: 3, kind: output, shape index: {1}]  }
   0x1   :  { %10 = vsyncpa [#allocation6], 0 }
   0x2   :  { %11 = vsyncpa [#allocation4], 0 }
   0x3   :  { %12 = vsyncpa [#allocation9], 0  ;;  %s218_s12 = smov [#allocation2]  }
   0x4   :  { %s18_s13 = sshll.u32 %s218_s12, 4  ;;  %s19_s13 = int_to_ptr.vmem [resolvable:$true] %s18_s13 }
   0x5   :  { %s138_s14 = scalar_lea.vmem %s19_s13, 256  ;;  %p143_p1 = scmp.lt.s32.totalorder %s19_s13, %s19_s13 }
   0x6   :  { %p139_p0 = scmp.ne.s32.totalorder %s19_s13, %s138_s14  ;;  %p144_p2 = scmp.lt.s32.totalorder %s138_s14, %s138_s14 }
   0x8   :  { %p145_p3 = por %p144_p2, %p143_p1 }
   0xa   :  { %p146_p4 = pnand %p145_p3, %p139_p0 }
   0xc   :  { %149 = shalt.err (!%p146_p4)
}
   0xd   :  { %s219_s15 = smov 128   ;;  %s220_s16 = smov 8  }
   0xe   :  { %24 = dma.hbm_to_vmem [thread:$0]  %s261_s0, 256, %s19_s13, [#allocation3], %s219_s15, %s219_s15, %s220_s16  }
   0xf   :  { %s221_s19 = smov [#allocation5]  }
  0x10   :  { %s30_s20 = sshll.u32 %s221_s19, 4  ;;  %s31_s20 = int_to_ptr.vmem [resolvable:$true] %s30_s20 }
  0x11   :  { %s158_s21 = scalar_lea.vmem %s31_s20, 256  ;;  %p163_p6 = scmp.lt.s32.totalorder %s31_s20, %s31_s20 }
  0x12   :  { %p159_p5 = scmp.ne.s32.totalorder %s31_s20, %s158_s21  ;;  %p164_p7 = scmp.lt.s32.totalorder %s158_s21, %s158_s21 }
  0x14   :  { %p165_p8 = por %p164_p7, %p163_p6 }
  0x16   :  { %p166_p9 = pnand %p165_p8, %p159_p5 }
  0x18   :  { %169 = shalt.err (!%p166_p9)
}
  0x19   :  { %36 = dma.hbm_to_vmem [thread:$0]  %s262_s1, 256, %s31_s20, [#allocation6], %s219_s15, %s219_s15, %s220_s16  }
  0x1a   :  { %210 = dma.done.wait [#allocation3], 256  }
  0x1b   :  { %211 = vsyncadd [#allocation3], 4294967040 }
  0x1c   :  { %212 = dma.done.wait [#allocation6], 256  }
  0x1d   :  { %213 = vsyncadd [#allocation6], 4294967040  ;;  %v43_v0 = vld [vmem:[#allocation2] sm:$0xff]  ;;  %v44_v1 = vld [vmem:[#allocation2 + $0x8] sm:$0xff]  ;;  %s222_s0 = smov [#allocation8]   ;;  %v223_v6 = vmov 0.0  }
  0x1e   :  { %v45_v2 = vld [vmem:[#allocation5] sm:$0xff]  ;;  %v46_v3 = vld [vmem:[#allocation5 + $0x8] sm:$0xff]  ;;  %122 = vlog2.f32 %v43_v0  ;;  %v55_v4 = vsub.f32 1.0, %v43_v0  ;;  %v56_v5 = vsub.f32 1.0, %v44_v1  ;;  %s99_s24 = sshll.u32 %s222_s0, 4  ;;  %s100_s24 = int_to_ptr.vmem [resolvable:$true] %s99_s24 }
  0x1f   :  { %vm47_vm0 = vcmp.ne.f32.partialorder %v45_v2, -1.0  ;;  %vm48_vm1 = vcmp.ne.f32.partialorder %v46_v3, -1.0  ;;  %124 = vlog2.f32 %v44_v1  ;;  %s170_s1 = scalar_lea.vmem %s100_s24, 128  ;;  %p175_p11 = scmp.lt.s32.totalorder %s100_s24, %s100_s24 }
  0x20   :  { %126 = vlog2.f32 %v55_v4  ;;  %v113_v7 = vsel %vm47_vm0, 1.0, %v223_v6  ;;  %v114_v8 = vsel %vm48_vm1, 1.0, %v223_v6  ;;  %p171_p10 = scmp.ne.s32.totalorder %s100_s24, %s170_s1  ;;  %p176_p12 = scmp.lt.s32.totalorder %s170_s1, %s170_s1 }
  0x21   :  { %128 = vlog2.f32 %v56_v5  ;;  %v81_v9 = vadd.f32 %v114_v8, %v113_v7 }
  0x22   :  { %p177_p13 = por %p176_p12, %p175_p11 }
  0x23   :  { %82 = vst [vmem:[#allocation8] sm:$0xff] %v81_v9 }
  0x24   :  { %p178_p0 = pnand %p177_p13, %p171_p10 }
  0x26   :  { %181 = shalt.err (!%p178_p0)
}
  0x27   :  { %102 = dma.vmem_to_hbm [thread:$0]  %s100_s24, 128, %s264_s3, [#allocation9]   ;;  %v65_v18 = vsub.f32 1.0, %v45_v2  ;;  %v66_v21 = vsub.f32 1.0, %v46_v3 }
  0x28   :  { %s224_s3 = smov [#allocation7]  }
  0x29   :  { %s89_s27 = sshll.u32 %s224_s3, 4  ;;  %s90_s27 = int_to_ptr.vmem [resolvable:$true] %s89_s27 }
  0x2a   :  { %s190_s28 = scalar_lea.vmem %s90_s27, 128  ;;  %p195_p2 = scmp.lt.s32.totalorder %s90_s27, %s90_s27 }
  0x2b   :  { %v123_v10 = vpop.eup %122  ;;  %p191_p1 = scmp.ne.s32.totalorder %s90_s27, %s190_s28  ;;  %p196_p3 = scmp.lt.s32.totalorder %s190_s28, %s190_s28 }
  0x2c   :  { %v125_v11 = vpop.eup %124  ;;  %v50_v12 = vmul.f32 0.6931472, %v123_v10 }
  0x2d   :  { %v127_v13 = vpop.eup %126  ;;  %v52_v14 = vmul.f32 0.6931472, %v125_v11  ;;  %p197_p4 = por %p196_p3, %p195_p2 }
  0x2e   :  { %v129_v15 = vpop.eup %128  ;;  %v53_v16 = vmax.f32 %v50_v12, -100.0  ;;  %v58_v17 = vmul.f32 0.6931472, %v127_v13 }
  0x2f   :  { %v54_v19 = vmax.f32 %v52_v14, -100.0  ;;  %v60_v20 = vmul.f32 0.6931472, %v129_v15  ;;  %p198_p5 = pnand %p197_p4, %p191_p1 }
  0x30   :  { %v61_v22 = vmax.f32 %v58_v17, -100.0  ;;  %v63_v23 = vmul.f32 %v53_v16, %v45_v2 }
  0x31   :  { %v62_v24 = vmax.f32 %v60_v20, -100.0  ;;  %v64_v25 = vmul.f32 %v54_v19, %v46_v3 }
  0x32   :  { %v67_v26 = vmul.f32 %v65_v18, %v61_v22 }
  0x33   :  { %v68_v27 = vmul.f32 %v66_v21, %v62_v24 }
  0x34   :  { %v69_v28 = vadd.f32 %v67_v26, %v63_v23 }
  0x35   :  { %v70_v29 = vadd.f32 %v68_v27, %v64_v25 }
  0x36   :  { %v71_v30 = vsub.f32 0.0, %v69_v28 }
  0x37   :  { %v72_v31 = vsub.f32 0.0, %v70_v29 }
  0x38   :  { %v73_v32 = vsel %vm47_vm0, %v71_v30, 0.0 }
  0x39   :  { %v74_v33 = vsel %vm48_vm1, %v72_v31, 0.0 }
  0x3a   :  { %v79_v34 = vadd.f32 %v74_v33, %v73_v32 }
  0x3c   :  { %80 = vst [vmem:[#allocation7] sm:$0xff] %v79_v34 }
  0x3d   :  { %201 = shalt.err (!%p198_p5)
}
  0x3e   :  { %92 = dma.vmem_to_hbm [thread:$0]  %s90_s27, 128, %s263_s2, [#allocation4]  }
  0x3f   :  { %214 = dma.done.wait [#allocation4], 128  }
  0x40   :  { %215 = vsyncadd [#allocation4], 4294967168 }
  0x41   :  { %216 = dma.done.wait [#allocation9], 128  }
  0x42   :  { %217 = vsyncadd [#allocation9], 4294967168 }
  0x43   :  { %109 = vsyncpa [#allocation3], 1 }
  0x44   :  { %110 = vsyncpa [#allocation6], 1 }
  0x45   :  { %111 = vsyncpa [#allocation4], 1 }
  0x46   :  { %112 = vsyncpa [#allocation9], 1 }

</bundles_post_ra>
